<compile_context>
chip_gen: v7x
topology: tpu7x:2x2x1
jax: 0.10.0
libtpu: 0.0.40
codegen_flags: <defaults>
</compile_context>

<pallas_src>
import jax
import jax.numpy as jnp
from jax.experimental import pallas as pl
from jax.experimental.pallas import tpu as pltpu


def _vmem_limit_bytes(footprint_bytes, *, floor=32 << 20, ceil=100 << 20):
    """Scoped-VMEM limit derived from the actual footprint (not hard-coded)."""
    return int(min(max(footprint_bytes, floor), ceil))


# ------------------------------ K/V projection --------------------------------
def _kv_proj_kernel(x_ref, wkv_ref, kv_ref):
    # bf16 feeds, f32 accumulation on the MXU; bf16 store halves HBM traffic.
    kv = jnp.dot(x_ref[...], wkv_ref[...], preferred_element_type=jnp.float32)
    kv_ref[...] = kv.astype(kv_ref.dtype)


def kv_projection_pallas(x_bf16, wkv_t_bf16, *, tile_n=512):
    n, c = x_bf16.shape
    c2 = wkv_t_bf16.shape[1]
    tile_n = min(tile_n, n)
    # double-buffered row tiles + resident fused weight + headroom
    footprint = (2 * (tile_n * c * 2 + tile_n * c2 * 2 + c * c2 * 2)
                 + (8 << 20))
    return pl.pallas_call(
        _kv_proj_kernel,
        out_shape=jax.ShapeDtypeStruct((n, c2), jnp.bfloat16),
        grid=(pl.cdiv(n, tile_n),),
        in_specs=[
            pl.BlockSpec((tile_n, c), lambda i: (i, 0)),   # x row tile (bf16)
            pl.BlockSpec((c, c2), lambda i: (0, 0)),       # [Wk^T | Wv^T] resident
        ],
        out_specs=pl.BlockSpec((tile_n, c2), lambda i: (i, 0)),
        compiler_params=pltpu.CompilerParams(
            dimension_semantics=("parallel",),
            vmem_limit_bytes=_vmem_limit_bytes(footprint)),
    )(x_bf16, wkv_t_bf16)


# -------------------- fused Q-proj + gather + attn + out-proj -----------------
def _fused_attn_kernel(x_ref, idx_ref, kv_ref, wq_ref, wp_ref, b_ref,
                       seg_ref, segt_ref, o_ref):
    tn, c = x_ref.shape
    kk = idx_ref.shape[1]
    n_nodes = kv_ref.shape[0]
    h = seg_ref.shape[1]

    # Q projection for this tile (scale pre-folded into Wq^T on the host).
    q = jnp.dot(x_ref[...], wq_ref[...], preferred_element_type=jnp.float32)

    # Neighbor gather: one bf16 one-hot matmul against the VMEM-resident (N, 2C)
    # [K|V] buffer (2C=256-wide output fills the 256x256 MXU on v6e/v7x).  The
    # one-hot is built directly in the bf16 matmul feed dtype (no f32 temp).
    # TODO(synk): for N beyond a few thousand, replace with a scalar-prefetch /
    # manual make_async_copy row gather (O(tn*K*C) DMA bytes) instead of the
    # O(tn*K*N*C)-MAC one-hot matmul and the full K|V VMEM residency.
    idx = idx_ref[...]                                               # (tn, K) i32
    iota = jax.lax.broadcasted_iota(jnp.int32, (tn, kk, n_nodes), 2)
    onehot = (idx[:, :, None] == iota).astype(jnp.bfloat16)
    onehot = onehot.reshape(tn * kk, n_nodes)                        # (tn*K, N)
    kvn = jnp.dot(onehot, kv_ref[...],
                  preferred_element_type=jnp.float32)                # (tn*K, 2C)
    kn = kvn[:, :c]
    vn = kvn[:, c:]

    # Scores: s[n,k,h] = sum_d q[n, h*D+d] * kn[n*K+k, h*D+d].  Lane-dense
    # elementwise product + per-head segmented reduce done as one C-wide matmul
    # (kept in f32 to preserve score precision).
    q_rep = jnp.broadcast_to(q[:, None, :], (tn, kk, c)).reshape(tn * kk, c)
    s = jnp.dot(q_rep * kn, seg_ref[...], preferred_element_type=jnp.float32)
    s = s.reshape(tn, kk, h)                                         # (tn, K, H)

    # Softmax over the K neighbors (f32, max-subtracted).
    m = jnp.max(s, axis=1, keepdims=True)
    p = jnp.exp(s - m)
    denom = jnp.sum(p, axis=1, keepdims=True)
    a = p * pl.reciprocal(denom, approx=False)                       # (tn, K, H)

    # Weighted sum of neighbor values, lane-dense over C.
    a_rep = jnp.dot(a.reshape(tn * kk, h), segt_ref[...],
                    preferred_element_type=jnp.float32)              # (tn*K, C)
    o = jnp.sum((a_rep * vn).reshape(tn, kk, c), axis=1)             # (tn, C)

    # Output projection + bias; bf16 feed, f32 accumulation, lane-dense store.
    y = jnp.dot(o.astype(jnp.bfloat16), wp_ref[...],
                preferred_element_type=jnp.float32) + b_ref[...]
    o_ref[...] = y.astype(o_ref.dtype)


def fused_neighbor_attention_pallas(x_bf16, neighbor_idx, kv_all, wq_t, wp_t,
                                    b_proj, num_heads, *, tile_n=128):
    n, c = x_bf16.shape
    kk = neighbor_idx.shape[1]
    d = c // num_heads
    tile_n = min(tile_n, n)

    # Per-head segment matrix: seg[ch, h] = 1.0 iff ch // D == h (+ transpose).
    head_of_ch = jnp.arange(c, dtype=jnp.int32) // d
    seg = (head_of_ch[:, None] ==
           jnp.arange(num_heads, dtype=jnp.int32)[None, :]).astype(jnp.float32)
    seg_t = seg.T                                                    # (H, C)
    b2 = b_proj.reshape(1, c).astype(jnp.float32)

    # VMEM budget: resident [K|V] / weights (double-buffered by the pipeline),
    # per-tile x/idx/out buffers, plus in-kernel iota/one-hot/kvn temps.
    # TODO(synk): mark constant-index residents pipeline_mode=pl.Buffered(1)
    # once single-buffering is confirmed supported, to halve resident VMEM.
    temps = tile_n * kk * n * (4 + 2) + tile_n * kk * 2 * c * 4 * 3
    footprint = (2 * kv_all.size * 2                      # [K|V] resident (bf16)
                 + 2 * 2 * c * c * 2                      # Wq^T, Wproj^T (bf16)
                 + 2 * (tile_n * c * 2 + tile_n * 128 * 4 + tile_n * c * 4)
                 + temps + (8 << 20))
    return pl.pallas_call(
        _fused_attn_kernel,
        out_shape=jax.ShapeDtypeStruct((n, c), jnp.float32),
        grid=(pl.cdiv(n, tile_n),),
        in_specs=[
            pl.BlockSpec((tile_n, c), lambda i: (i, 0)),     # x row tile (bf16)
            pl.BlockSpec((tile_n, kk), lambda i: (i, 0)),    # neighbor idx tile
            pl.BlockSpec((n, 2 * c), lambda i: (0, 0)),      # [K|V] resident (bf16)
            pl.BlockSpec((c, c), lambda i: (0, 0)),          # scale*Wq^T (bf16)
            pl.BlockSpec((c, c), lambda i: (0, 0)),          # Wproj^T (bf16)
            pl.BlockSpec((1, c), lambda i: (0, 0)),          # proj bias (f32)
            pl.BlockSpec((c, num_heads), lambda i: (0, 0)),  # seg (f32)
            pl.BlockSpec((num_heads, c), lambda i: (0, 0)),  # seg^T (f32)
        ],
        out_specs=pl.BlockSpec((tile_n, c), lambda i: (i, 0)),
        compiler_params=pltpu.CompilerParams(
            # TODO(synk): on v7x (2 TensorCores) switch this axis to
            # pltpu.CORE_PARALLEL to shard row tiles across both cores.
            dimension_semantics=("parallel",),
            vmem_limit_bytes=_vmem_limit_bytes(footprint)),
    )(x_bf16, neighbor_idx, kv_all, wq_t, wp_t, b2, seg, seg_t)


# --------------------------------- forward ------------------------------------
def attention_forward(x, neighbor_idx, w_qkv, w_proj, b_proj, num_heads,
                      *, tile_n=128, kv_tile_n=512):
    n, c = x.shape
    d = c // num_heads
    scale = float(d) ** -0.5

    # nn.Linear(dim, 3*dim, bias=False): rows [0:C)=Q, [C:2C)=K, [2C:3C)=V.
    # Fold the attention scale into Wq on the host; concatenate K|V weights so
    # kv_proj is a single 2C-wide matmul.  All MXU feeds are bf16 (f32 acc).
    wq_t = (w_qkv[:c] * scale).T.astype(jnp.bfloat16)                # (C, C)
    wkv_t = jnp.concatenate([w_qkv[c:2 * c].T, w_qkv[2 * c:].T],
                            axis=1).astype(jnp.bfloat16)             # (C, 2C)
    wp_t = w_proj.T.astype(jnp.bfloat16)                             # (C, C)
    x_bf16 = x.astype(jnp.bfloat16)

    kv_all = kv_projection_pallas(x_bf16, wkv_t, tile_n=kv_tile_n)   # (N, 2C) bf16
    return fused_neighbor_attention_pallas(
        x_bf16, neighbor_idx, kv_all, wq_t, wp_t, b_proj, num_heads,
        tile_n=tile_n)


# ---------------------------- pure-JAX reference -------------------------------
def attention_reference(x, neighbor_idx, w_qkv, w_proj, b_proj, num_heads):
    n, c = x.shape
    h = num_heads
    d = c // h
    scale = float(d) ** -0.5
    qkv = (x @ w_qkv.T).reshape(n, 3, h, d)
    q, k_, v_ = qkv[:, 0], qkv[:, 1], qkv[:, 2]                      # (N, H, D)
    kn = k_[neighbor_idx]                                            # (N, K, H, D)
    vn = v_[neighbor_idx]
    s = jnp.einsum("nhd,nkhd->nhk", q, kn) * scale
    a = jax.nn.softmax(s, axis=-1)
    o = jnp.einsum("nhk,nkhd->nhd", a, vn)                           # (N, H, D)
    return o.reshape(n, c) @ w_proj.T + b_proj


# ------------------------------------ main --------------------------------------
if __name__ == "__main__":
    N, C = 256, 128        # nodes, feature dim (C multiple of 128 -> lane-dense)
    H = 8                  # num_heads
    K = 8                  # neighbors per node

    key = jax.random.PRNGKey(0)
    kx, kidx, kq, kp, kb = jax.random.split(key, 5)

    x = jax.random.normal(kx, (N, C), dtype=jnp.float32)
    neighbor_idx = jax.random.randint(kidx, (N, K), 0, N, dtype=jnp.int32)

    # nn.Linear(dim, dim*3, bias=False) and nn.Linear(dim, dim) weights.
    w_qkv = 0.05 * jax.random.normal(kq, (3 * C, C), dtype=jnp.float32)
    w_proj = 0.05 * jax.random.normal(kp, (C, C), dtype=jnp.float32)
    b_proj = 0.05 * jax.random.normal(kb, (C,), dtype=jnp.float32)

    out = attention_forward(x, neighbor_idx, w_qkv, w_proj, b_proj, H)
    out = jax.block_until_ready(out)

    ref = attention_reference(x, neighbor_idx, w_qkv, w_proj, b_proj, H)
    max_err = float(jnp.max(jnp.abs(out - ref)))
    assert out.shape == (N, C), out.shape
    # bf16 MXU feeds with f32 accumulation: tolerance relaxed vs pure-f32 path.
    assert max_err < 2.5e-2, f"mismatch vs reference: {max_err}"

    print("KERNEL_OK")
</pallas_src>

<mosaic_0001>
module attributes {stable_mosaic.version = 11 : i64} {
  func.func @_kv_proj_kernel(%arg0: i32, %arg1: memref<256x128xbf16, #tpu.memory_space<vmem>>, %arg2: memref<128x256xbf16, #tpu.memory_space<vmem>>, %arg3: memref<256x256xbf16, #tpu.memory_space<vmem>>) attributes {dimension_semantics = [#tpu.dimension_semantics<parallel>], iteration_bounds = array<i64: 1>, scalar_prefetch = 0 : i64, scratch_operands = 0 : i64, tpu.core_type = #tpu.core_type<tc>, window_params = [{transform_indices = @transform_0, window_bounds = array<i64: 256, 128>}, {pipeline_mode = #tpu.pipeline_mode<synchronous>, transform_indices = @transform_1, window_bounds = array<i64: 128, 256>}, {transform_indices = @transform_2, window_bounds = array<i64: 256, 256>}]} {
    %c0 = arith.constant 0 : index
    %c0_0 = arith.constant 0 : index
    %0 = vector.load %arg1[%c0, %c0_0] : memref<256x128xbf16, #tpu.memory_space<vmem>>, vector<256x128xbf16>
    %c0_1 = arith.constant 0 : index
    %c0_2 = arith.constant 0 : index
    %1 = vector.load %arg2[%c0_1, %c0_2] : memref<128x256xbf16, #tpu.memory_space<vmem>>, vector<128x256xbf16>
    %cst = arith.constant dense<0.000000e+00> : vector<256x256xf32>
    %2 = tpu.matmul %0, %1, %cst {dimension_numbers = #tpu.dot_dimension_numbers<[1], [0], [0], [1], [0, 0, 1, 1], [], []>} : vector<256x128xbf16>, vector<128x256xbf16>, vector<256x256xf32> -> vector<256x256xf32>
    %3 = arith.truncf %2 : vector<256x256xf32> to vector<256x256xbf16>
    %c0_3 = arith.constant 0 : index
    %c0_4 = arith.constant 0 : index
    %4 = vector.load %arg3[%c0_3, %c0_4] : memref<256x256xbf16, #tpu.memory_space<vmem>>, vector<256x256xbf16>
    tpu.vector_store %arg3[%c0_3, %c0_4], %3 {strides = array<i32>} : memref<256x256xbf16, #tpu.memory_space<vmem>>, vector<256x256xbf16>,
    return
  }
  func.func @transform_0(%arg0: i32) -> (i32, i32) {
    %c0_i32 = arith.constant 0 : i32
    %c0_i32_0 = arith.constant 0 : i32
    return %arg0, %c0_i32 : i32, i32
  }
  func.func @transform_1(%arg0: i32) -> (i32, i32) {
    %c0_i32 = arith.constant 0 : i32
    %c0_i32_0 = arith.constant 0 : i32
    %c0_i32_1 = arith.constant 0 : i32
    return %c0_i32, %c0_i32_0 : i32, i32
  }
  func.func @transform_2(%arg0: i32) -> (i32, i32) {
    %c0_i32 = arith.constant 0 : i32
    %c0_i32_0 = arith.constant 0 : i32
    return %arg0, %c0_i32 : i32, i32
  }
}

</mosaic_0001>

<bundles_post_ra>
// kernel: tpu_custom_call.1
= control target key start
LH: loop header
LB: loop body
LE: loop exit
PB: predicated region body
PF: predicated region fallthrough
CT: control target
= control target key end

     0   :  { %7 = vsyncpa [#allocation3], 0  ;;  %s1013_s0 = inlined_call_operand.hbm [shape: bf16[256,128], index: 0, kind: input, shape index: {}]   ;;  %s1014_s1 = inlined_call_operand.hbm [shape: bf16[128,256], index: 1, kind: input, shape index: {}]   ;;  %s1015_s2 = inlined_call_operand.hbm [shape: bf16[256,256], index: 2, kind: output, shape index: {}]  }
   0x1   :  { %8 = vsyncpa [#allocation6], 0 }
   0x2   :  { %9 = vsyncpa [#allocation4], 0  ;;  %s932_s9 = smov [#allocation2]   ;;  %s860_s13 = scalar_lea.hbm %s1013_s0, 2048 }
   0x3   :  { %s15_s10 = sshll.u32 %s932_s9, 4  ;;  %p861_p0 = scmp.ne.s32.totalorder %s1013_s0, %s860_s13  ;;  %s16_s10 = int_to_ptr.vmem [resolvable:$true] %s15_s10 }
   0x4   :  { %p864_p1 = scmp.lt.u32.totalorder %s860_s13, %s1013_s0 }
   0x6   :  { %p866_p2 = pnand %p864_p1, %p861_p0 }
   0x8   :  { %869 = shalt.err (!%p866_p2)
}
   0x9   :  { %s870_s18 = scalar_lea.vmem %s16_s10, 2048  ;;  %p875_p4 = scmp.lt.s32.totalorder %s16_s10, %s16_s10 }
   0xa   :  { %p871_p3 = scmp.ne.s32.totalorder %s16_s10, %s870_s18  ;;  %p876_p5 = scmp.lt.s32.totalorder %s870_s18, %s870_s18 }
   0xc   :  { %p877_p6 = por %p876_p5, %p875_p4 }
   0xe   :  { %p878_p7 = pnand %p877_p6, %p871_p3 }
  0x10   :  { %881 = shalt.err (!%p878_p7)
}
  0x11   :  { %s933_s19 = smov 64   ;;  %s934_s20 = smov 4  }
  0x12   :  { %21 = dma.hbm_to_vmem [thread:$0]  %s1013_s0, 2048, %s16_s10, [#allocation3], %s933_s19, %s933_s19, %s934_s20  }
  0x13   :  { %s935_s23 = smov [#allocation5]   ;;  %s882_s27 = scalar_lea.hbm %s1014_s1, 2048 }
  0x14   :  { %s27_s24 = sshll.u32 %s935_s23, 4  ;;  %p883_p8 = scmp.ne.s32.totalorder %s1014_s1, %s882_s27  ;;  %s28_s24 = int_to_ptr.vmem [resolvable:$true] %s27_s24 }
  0x15   :  { %p886_p9 = scmp.lt.u32.totalorder %s882_s27, %s1014_s1 }
  0x17   :  { %p888_p10 = pnand %p886_p9, %p883_p8 }
  0x19   :  { %891 = shalt.err (!%p888_p10)
}
  0x1a   :  { %s892_s4 = scalar_lea.vmem %s28_s24, 2048  ;;  %p897_p12 = scmp.lt.s32.totalorder %s28_s24, %s28_s24 }
  0x1b   :  { %p893_p11 = scmp.ne.s32.totalorder %s28_s24, %s892_s4  ;;  %p898_p13 = scmp.lt.s32.totalorder %s892_s4, %s892_s4 }
  0x1d   :  { %p899_p0 = por %p898_p13, %p897_p12 }
  0x1f   :  { %p900_p1 = pnand %p899_p0, %p893_p11 }
  0x21   :  { %903 = shalt.err (!%p900_p1)
}
  0x22   :  { %s936_s0 = smov 128   ;;  %s937_s5 = smov 8  }
  0x23   :  { %33 = dma.hbm_to_vmem [thread:$0]  %s1014_s1, 2048, %s28_s24, [#allocation6], %s936_s0, %s936_s0, %s937_s5  }
  0x24   :  { %926 = dma.done.wait [#allocation3], 2048  }
  0x25   :  { %927 = vsyncadd [#allocation3], 4294965248 }
  0x26   :  { %928 = dma.done.wait [#allocation6], 2048  }
  0x27   :  { %929 = vsyncadd [#allocation6], 4294965248  ;;  %v938_v0 = vmov 0   ;;  %v820_v1 = vld [vmem:[#allocation5 + $0x4] ss:$8 sps:$4 sm:$0xff]   ;;  %v848_v21 = vld [vmem:[#allocation2 + $0x10] sm:$0xff]  }
  0x28   :  { %297 = vmatprep.mubr.bf16.mxu0 %v938_v0  ;;  %377 = vmatprep.mubr.bf16.mxu1 %v938_v0  ;;  %v822_v2 = vld [vmem:[#allocation5] ss:$8 sps:$4 sm:$0xff]   ;;  %v823_v3 = vld [vmem:[#allocation5 + $0x14] ss:$8 sps:$4 sm:$0xff]   ;;  %v825_v4 = vld [vmem:[#allocation5 + $0x10] ss:$8 sps:$4 sm:$0xff]  }
  0x29   :  { %265 = vmatprep.subr.bf16.mxu0 %v820_v1  ;;  %796 = vmatprep.subr.bf16.mxu1 %v820_v1  ;;  %v826_v5 = vld [vmem:[#allocation5 + $0x24] ss:$8 sps:$4 sm:$0xff]   ;;  %v828_v6 = vld [vmem:[#allocation5 + $0x20] ss:$8 sps:$4 sm:$0xff]   ;;  %v829_v7 = vld [vmem:[#allocation5 + $0x34] ss:$8 sps:$4 sm:$0xff]  }
  0x2a   :  { %266 = vmatpush1.bf16.msra.mxu0 %v822_v2  ;;  %804 = vmatpush1.bf16.msra.mxu1 %v822_v2  ;;  %v831_v8 = vld [vmem:[#allocation5 + $0x30] ss:$8 sps:$4 sm:$0xff]   ;;  %v832_v9 = vld [vmem:[#allocation5 + $0x44] ss:$8 sps:$4 sm:$0xff]   ;;  %v834_v10 = vld [vmem:[#allocation5 + $0x40] ss:$8 sps:$4 sm:$0xff]  }
  0x2b   :  { %267 = vmatprep.subr.bf16.mxu0 %v823_v3  ;;  %797 = vmatprep.subr.bf16.mxu1 %v823_v3  ;;  %v835_v11 = vld [vmem:[#allocation5 + $0x54] ss:$8 sps:$4 sm:$0xff]   ;;  %v837_v12 = vld [vmem:[#allocation5 + $0x50] ss:$8 sps:$4 sm:$0xff]   ;;  %v838_v13 = vld [vmem:[#allocation5 + $0x64] ss:$8 sps:$4 sm:$0xff]  }
  0x2c   :  { %v840_v14 = vld [vmem:[#allocation5 + $0x60] ss:$8 sps:$4 sm:$0xff]   ;;  %v841_v15 = vld [vmem:[#allocation5 + $0x74] ss:$8 sps:$4 sm:$0xff]   ;;  %v843_v16 = vld [vmem:[#allocation5 + $0x70] ss:$8 sps:$4 sm:$0xff]  }
  0x2d   :  { %v844_v17 = vld [vmem:[#allocation2] sm:$0xff]   ;;  %v846_v19 = vld [vmem:[#allocation2 + $0x8] sm:$0xff]   ;;  %v849_v22 = vld [vmem:[#allocation2 + $0x50] sm:$0xff]   ;;  %s939_s1 = smov [#allocation7]  }
  0x2e   :  { %268 = vmatpush1.bf16.msra.mxu0 %v825_v4  ;;  %805 = vmatpush1.bf16.msra.mxu1 %v825_v4  ;;  %v845_v18 = vld [vmem:[#allocation2 + $0x40] sm:$0xff]   ;;  %v847_v20 = vld [vmem:[#allocation2 + $0x48] sm:$0xff]   ;;  %v850_v23 = vld [vmem:[#allocation2 + $0x18] sm:$0xff]   ;;  %s687_s8 = sshll.u32 %s939_s1, 4  ;;  %s688_s8 = int_to_ptr.vmem [resolvable:$true] %s687_s8 }
  0x2f   :  { %269 = vmatprep.subr.bf16.mxu0 %v826_v5  ;;  %798 = vmatprep.subr.bf16.mxu1 %v826_v5  ;;  %v851_v24 = vld [vmem:[#allocation2 + $0x58] sm:$0xff]   ;;  %v852_v25 = vld [vmem:[#allocation2 + $0x20] sm:$0xff]   ;;  %v854_v27 = vld [vmem:[#allocation2 + $0x28] sm:$0xff]   ;;  %s904_s9 = scalar_lea.vmem %s688_s8, 4096  ;;  %p909_p3 = scmp.lt.s32.totalorder %s688_s8, %s688_s8 }
  0x30   :  { %v853_v26 = vld [vmem:[#allocation2 + $0x60] sm:$0xff]   ;;  %v855_v28 = vld [vmem:[#allocation2 + $0x68] sm:$0xff]   ;;  %v856_v29 = vld [vmem:[#allocation2 + $0x30] sm:$0xff]   ;;  %p905_p2 = scmp.ne.s32.totalorder %s688_s8, %s904_s9  ;;  %p910_p4 = scmp.lt.s32.totalorder %s904_s9, %s904_s9 }
  0x31   :  { %v857_v30 = vld [vmem:[#allocation2 + $0x70] sm:$0xff]   ;;  %v858_v31 = vld [vmem:[#allocation2 + $0x38] sm:$0xff]  }
  0x32   :  { %270 = vmatpush1.bf16.msra.mxu0 %v828_v6  ;;  %806 = vmatpush1.bf16.msra.mxu1 %v828_v6  ;;  %v859_v32 = vld [vmem:[#allocation2 + $0x78] sm:$0xff]   ;;  %p911_p5 = por %p910_p4, %p909_p3 }
  0x33   :  { %271 = vmatprep.subr.bf16.mxu0 %v829_v7  ;;  %799 = vmatprep.subr.bf16.mxu1 %v829_v7 }
  0x34   :  { %p912_p6 = pnand %p911_p5, %p905_p2 }
  0x36   :  { %272 = vmatpush1.bf16.msra.mxu0 %v831_v8  ;;  %807 = vmatpush1.bf16.msra.mxu1 %v831_v8 }
  0x37   :  { %273 = vmatprep.subr.bf16.mxu0 %v832_v9  ;;  %800 = vmatprep.subr.bf16.mxu1 %v832_v9 }
  0x3a   :  { %274 = vmatpush1.bf16.msra.mxu0 %v834_v10  ;;  %808 = vmatpush1.bf16.msra.mxu1 %v834_v10 }
  0x3b   :  { %275 = vmatprep.subr.bf16.mxu0 %v835_v11  ;;  %801 = vmatprep.subr.bf16.mxu1 %v835_v11 }
  0x3e   :  { %276 = vmatpush1.bf16.msra.mxu0 %v837_v12  ;;  %809 = vmatpush1.bf16.msra.mxu1 %v837_v12 }
  0x3f   :  { %277 = vmatprep.subr.bf16.mxu0 %v838_v13  ;;  %802 = vmatprep.subr.bf16.mxu1 %v838_v13 }
  0x42   :  { %278 = vmatpush1.bf16.msra.mxu0 %v840_v14  ;;  %810 = vmatpush1.bf16.msra.mxu1 %v840_v14 }
  0x43   :  { %279 = vmatprep.subr.bf16.mxu0 %v841_v15  ;;  %803 = vmatprep.subr.bf16.mxu1 %v841_v15 }
  0x46   :  { %280 = vmatpush1.bf16.msra.mxu0 %v843_v16  ;;  %811 = vmatpush1.bf16.msra.mxu1 %v843_v16 }
  0x49   :  { %298 = vmatmul.mubr.bf16.vlgmr.msra.gmra.mrb[0].mxu0 %v844_v17  ;;  %378 = vmatmul.mubr.bf16.vlgmr.msra.gmra.mrb[0].mxu1 %v845_v18 }
  0x4a   :  { %307 = vmatprep.mubr.bf16.mxu0 %v938_v0  ;;  %387 = vmatprep.mubr.bf16.mxu1 %v938_v0 }
  0x51   :  { %308 = vmatmul.mubr.bf16.gmra.mrb[4].mxu0 %v846_v19  ;;  %388 = vmatmul.mubr.bf16.gmra.mrb[4].mxu1 %v847_v20 }
  0x52   :  { %317 = vmatprep.mubr.bf16.mxu0 %v938_v0  ;;  %397 = vmatprep.mubr.bf16.mxu1 %v938_v0 }
  0x59   :  { %318 = vmatmul.mubr.bf16.gmra.mrb[8].mxu0 %v848_v21  ;;  %398 = vmatmul.mubr.bf16.gmra.mrb[8].mxu1 %v849_v22 }
  0x5a   :  { %327 = vmatprep.mubr.bf16.mxu0 %v938_v0  ;;  %407 = vmatprep.mubr.bf16.mxu1 %v938_v0 }
  0x61   :  { %328 = vmatmul.mubr.bf16.gmra.mrb[12].mxu0 %v850_v23  ;;  %408 = vmatmul.mubr.bf16.gmra.mrb[12].mxu1 %v851_v24 }
  0x62   :  { %337 = vmatprep.mubr.bf16.mxu0 %v938_v0  ;;  %417 = vmatprep.mubr.bf16.mxu1 %v938_v0 }
  0x69   :  { %338 = vmatmul.mubr.bf16.gmra.mrb[16].mxu0 %v852_v25  ;;  %418 = vmatmul.mubr.bf16.gmra.mrb[16].mxu1 %v853_v26 }
  0x6a   :  { %347 = vmatprep.mubr.bf16.mxu0 %v938_v0  ;;  %427 = vmatprep.mubr.bf16.mxu1 %v938_v0 }
  0x71   :  { %348 = vmatmul.mubr.bf16.gmra.mrb[20].mxu0 %v854_v27  ;;  %428 = vmatmul.mubr.bf16.gmra.mrb[20].mxu1 %v855_v28 }
  0x72   :  { %357 = vmatprep.mubr.bf16.mxu0 %v938_v0  ;;  %437 = vmatprep.mubr.bf16.mxu1 %v938_v0 }
  0x79   :  { %358 = vmatmul.mubr.bf16.gmra.mrb[24].mxu0 %v856_v29  ;;  %438 = vmatmul.mubr.bf16.gmra.mrb[24].mxu1 %v857_v30 }
  0x7a   :  { %367 = vmatprep.mubr.bf16.mxu0 %v938_v0  ;;  %447 = vmatprep.mubr.bf16.mxu1 %v938_v0 }
  0x81   :  { %368 = vmatmul.mubr.bf16.gmra.mrb[28].mxu0 %v858_v31  ;;  %448 = vmatmul.mubr.bf16.gmra.mrb[28].mxu1 %v859_v32 }
 0x11c   :  { %v299_v33 = vpop.f32.mrb[0].mxu0  ;;  %v379_v34 = vpop.f32.mrb[0].mxu1 }
 0x11d   :  { %v301_v35 = vpop.f32.mrb[1].mxu0  ;;  %v381_v36 = vpop.f32.mrb[1].mxu1 }
 0x11e   :  { %v764_v37 = vpack.c.bf16 %v301_v35, %v299_v33  ;;  %v780_v38 = vpack.c.bf16 %v381_v36, %v379_v34  ;;  %v303_v39 = vpop.f32.mrb[2].mxu0  ;;  %v383_v40 = vpop.f32.mrb[2].mxu1 }
 0x11f   :  { %v305_v41 = vpop.f32.mrb[3].mxu0  ;;  %v385_v42 = vpop.f32.mrb[3].mxu1 }
 0x120   :  { %650 = vst [vmem:[#allocation7] sm:$0xff] %v764_v37  ;;  %666 = vst [vmem:[#allocation7 + $0x80] sm:$0xff] %v780_v38  ;;  %v765_v43 = vpack.c.bf16 %v305_v41, %v303_v39  ;;  %v781_v44 = vpack.c.bf16 %v385_v42, %v383_v40 }
 0x122   :  { %651 = vst [vmem:[#allocation7 + $0x8] sm:$0xff] %v765_v43  ;;  %667 = vst [vmem:[#allocation7 + $0x88] sm:$0xff] %v781_v44 }
 0x124   :  { %v309_v45 = vpop.f32.mrb[4].mxu0  ;;  %v389_v46 = vpop.f32.mrb[4].mxu1 }
 0x125   :  { %v311_v47 = vpop.f32.mrb[5].mxu0  ;;  %v391_v48 = vpop.f32.mrb[5].mxu1 }
 0x126   :  { %v766_v49 = vpack.c.bf16 %v311_v47, %v309_v45  ;;  %v782_v50 = vpack.c.bf16 %v391_v48, %v389_v46  ;;  %v313_v51 = vpop.f32.mrb[6].mxu0  ;;  %v393_v52 = vpop.f32.mrb[6].mxu1 }
 0x127   :  { %v315_v53 = vpop.f32.mrb[7].mxu0  ;;  %v395_v54 = vpop.f32.mrb[7].mxu1 }
 0x128   :  { %652 = vst [vmem:[#allocation7 + $0x10] sm:$0xff] %v766_v49  ;;  %668 = vst [vmem:[#allocation7 + $0x90] sm:$0xff] %v782_v50  ;;  %v767_v55 = vpack.c.bf16 %v315_v53, %v313_v51  ;;  %v783_v56 = vpack.c.bf16 %v395_v54, %v393_v52 }
 0x12a   :  { %653 = vst [vmem:[#allocation7 + $0x18] sm:$0xff] %v767_v55  ;;  %669 = vst [vmem:[#allocation7 + $0x98] sm:$0xff] %v783_v56 }
 0x12c   :  { %v319_v57 = vpop.f32.mrb[8].mxu0  ;;  %v399_v58 = vpop.f32.mrb[8].mxu1 }
 0x12d   :  { %v321_v59 = vpop.f32.mrb[9].mxu0  ;;  %v401_v60 = vpop.f32.mrb[9].mxu1 }
 0x12e   :  { %v768_v61 = vpack.c.bf16 %v321_v59, %v319_v57  ;;  %v784_v62 = vpack.c.bf16 %v401_v60, %v399_v58  ;;  %v323_v63 = vpop.f32.mrb[10].mxu0  ;;  %v403_v0 = vpop.f32.mrb[10].mxu1 }
 0x12f   :  { %v325_v1 = vpop.f32.mrb[11].mxu0  ;;  %v405_v2 = vpop.f32.mrb[11].mxu1 }
 0x130   :  { %654 = vst [vmem:[#allocation7 + $0x20] sm:$0xff] %v768_v61  ;;  %670 = vst [vmem:[#allocation7 + $0xa0] sm:$0xff] %v784_v62  ;;  %v769_v3 = vpack.c.bf16 %v325_v1, %v323_v63  ;;  %v785_v4 = vpack.c.bf16 %v405_v2, %v403_v0 }
 0x132   :  { %655 = vst [vmem:[#allocation7 + $0x28] sm:$0xff] %v769_v3  ;;  %671 = vst [vmem:[#allocation7 + $0xa8] sm:$0xff] %v785_v4 }
 0x134   :  { %v329_v5 = vpop.f32.mrb[12].mxu0  ;;  %v409_v6 = vpop.f32.mrb[12].mxu1 }
 0x135   :  { %v331_v7 = vpop.f32.mrb[13].mxu0  ;;  %v411_v8 = vpop.f32.mrb[13].mxu1 }
 0x136   :  { %v770_v9 = vpack.c.bf16 %v331_v7, %v329_v5  ;;  %v786_v10 = vpack.c.bf16 %v411_v8, %v409_v6  ;;  %v333_v11 = vpop.f32.mrb[14].mxu0  ;;  %v413_v12 = vpop.f32.mrb[14].mxu1 }
 0x137   :  { %v335_v13 = vpop.f32.mrb[15].mxu0  ;;  %v415_v14 = vpop.f32.mrb[15].mxu1 }
 0x138   :  { %656 = vst [vmem:[#allocation7 + $0x30] sm:$0xff] %v770_v9  ;;  %672 = vst [vmem:[#allocation7 + $0xb0] sm:$0xff] %v786_v10  ;;  %v771_v15 = vpack.c.bf16 %v335_v13, %v333_v11  ;;  %v787_v16 = vpack.c.bf16 %v415_v14, %v413_v12 }
 0x13a   :  { %657 = vst [vmem:[#allocation7 + $0x38] sm:$0xff] %v771_v15  ;;  %673 = vst [vmem:[#allocation7 + $0xb8] sm:$0xff] %v787_v16 }
 0x13c   :  { %v339_v17 = vpop.f32.mrb[16].mxu0  ;;  %v419_v18 = vpop.f32.mrb[16].mxu1 }
 0x13d   :  { %v341_v19 = vpop.f32.mrb[17].mxu0  ;;  %v421_v20 = vpop.f32.mrb[17].mxu1 }
 0x13e   :  { %v772_v21 = vpack.c.bf16 %v341_v19, %v339_v17  ;;  %v788_v22 = vpack.c.bf16 %v421_v20, %v419_v18  ;;  %v343_v23 = vpop.f32.mrb[18].mxu0  ;;  %v423_v24 = vpop.f32.mrb[18].mxu1 }
 0x13f   :  { %v345_v25 = vpop.f32.mrb[19].mxu0  ;;  %v425_v26 = vpop.f32.mrb[19].mxu1 }
 0x140   :  { %658 = vst [vmem:[#allocation7 + $0x40] sm:$0xff] %v772_v21  ;;  %674 = vst [vmem:[#allocation7 + $0xc0] sm:$0xff] %v788_v22  ;;  %v773_v27 = vpack.c.bf16 %v345_v25, %v343_v23  ;;  %v789_v28 = vpack.c.bf16 %v425_v26, %v423_v24 }
 0x142   :  { %659 = vst [vmem:[#allocation7 + $0x48] sm:$0xff] %v773_v27  ;;  %675 = vst [vmem:[#allocation7 + $0xc8] sm:$0xff] %v789_v28 }
 0x144   :  { %v349_v29 = vpop.f32.mrb[20].mxu0  ;;  %v429_v30 = vpop.f32.mrb[20].mxu1 }
 0x145   :  { %v351_v31 = vpop.f32.mrb[21].mxu0  ;;  %v431_v32 = vpop.f32.mrb[21].mxu1 }
 0x146   :  { %v774_v33 = vpack.c.bf16 %v351_v31, %v349_v29  ;;  %v790_v34 = vpack.c.bf16 %v431_v32, %v429_v30  ;;  %v353_v35 = vpop.f32.mrb[22].mxu0  ;;  %v433_v36 = vpop.f32.mrb[22].mxu1 }
 0x147   :  { %v355_v37 = vpop.f32.mrb[23].mxu0  ;;  %v435_v38 = vpop.f32.mrb[23].mxu1 }
 0x148   :  { %660 = vst [vmem:[#allocation7 + $0x50] sm:$0xff] %v774_v33  ;;  %676 = vst [vmem:[#allocation7 + $0xd0] sm:$0xff] %v790_v34  ;;  %v775_v39 = vpack.c.bf16 %v355_v37, %v353_v35  ;;  %v791_v40 = vpack.c.bf16 %v435_v38, %v433_v36 }
 0x14a   :  { %661 = vst [vmem:[#allocation7 + $0x58] sm:$0xff] %v775_v39  ;;  %677 = vst [vmem:[#allocation7 + $0xd8] sm:$0xff] %v791_v40 }
 0x14c   :  { %v359_v41 = vpop.f32.mrb[24].mxu0  ;;  %v439_v42 = vpop.f32.mrb[24].mxu1 }
 0x14d   :  { %v361_v43 = vpop.f32.mrb[25].mxu0  ;;  %v441_v44 = vpop.f32.mrb[25].mxu1 }
 0x14e   :  { %v776_v45 = vpack.c.bf16 %v361_v43, %v359_v41  ;;  %v792_v46 = vpack.c.bf16 %v441_v44, %v439_v42  ;;  %v363_v47 = vpop.f32.mrb[26].mxu0  ;;  %v443_v48 = vpop.f32.mrb[26].mxu1 }
 0x14f   :  { %v365_v49 = vpop.f32.mrb[27].mxu0  ;;  %v445_v50 = vpop.f32.mrb[27].mxu1 }
 0x150   :  { %662 = vst [vmem:[#allocation7 + $0x60] sm:$0xff] %v776_v45  ;;  %678 = vst [vmem:[#allocation7 + $0xe0] sm:$0xff] %v792_v46  ;;  %v777_v51 = vpack.c.bf16 %v365_v49, %v363_v47  ;;  %v793_v52 = vpack.c.bf16 %v445_v50, %v443_v48 }
 0x152   :  { %663 = vst [vmem:[#allocation7 + $0x68] sm:$0xff] %v777_v51  ;;  %679 = vst [vmem:[#allocation7 + $0xe8] sm:$0xff] %v793_v52 }
 0x154   :  { %v369_v53 = vpop.f32.mrb[28].mxu0  ;;  %v449_v54 = vpop.f32.mrb[28].mxu1 }
 0x155   :  { %v371_v55 = vpop.f32.mrb[29].mxu0  ;;  %v451_v56 = vpop.f32.mrb[29].mxu1 }
 0x156   :  { %v778_v57 = vpack.c.bf16 %v371_v55, %v369_v53  ;;  %v794_v58 = vpack.c.bf16 %v451_v56, %v449_v54  ;;  %v373_v59 = vpop.f32.mrb[30].mxu0  ;;  %v453_v60 = vpop.f32.mrb[30].mxu1 }
 0x157   :  { %v375_v61 = vpop.f32.mrb[31].mxu0  ;;  %v455_v62 = vpop.f32.mrb[31].mxu1 }
 0x158   :  { %664 = vst [vmem:[#allocation7 + $0x70] sm:$0xff] %v778_v57  ;;  %680 = vst [vmem:[#allocation7 + $0xf0] sm:$0xff] %v794_v58  ;;  %v779_v63 = vpack.c.bf16 %v375_v61, %v373_v59  ;;  %v795_v0 = vpack.c.bf16 %v455_v62, %v453_v60 }
 0x15a   :  { %665 = vst [vmem:[#allocation7 + $0x78] sm:$0xff] %v779_v63  ;;  %681 = vst [vmem:[#allocation7 + $0xf8] sm:$0xff] %v795_v0 }
 0x15b   :  { %915 = shalt.err (!%p912_p6)
}
 0x15c   :  { %s916_s12 = scalar_lea.hbm %s1015_s2, 4096 }
 0x15d   :  { %p917_p7 = scmp.ne.s32.totalorder %s1015_s2, %s916_s12  ;;  %p920_p8 = scmp.lt.u32.totalorder %s916_s12, %s1015_s2 }
 0x15f   :  { %p922_p9 = pnand %p920_p8, %p917_p7 }
 0x161   :  { %925 = shalt.err (!%p922_p9)
}
 0x162   :  { %693 = dma.vmem_to_hbm [thread:$0]  %s688_s8, 4096, %s1015_s2, [#allocation4], %s936_s0, %s936_s0, %s937_s5  }
 0x163   :  { %930 = dma.done.wait [#allocation4], 4096  }
 0x164   :  { %931 = vsyncadd [#allocation4], 4294963200 }
 0x165   :  { %697 = vsyncpa [#allocation3], 1 }
 0x166   :  { %698 = vsyncpa [#allocation6], 1 }
 0x167   :  { %699 = vsyncpa [#allocation4], 1 }

</bundles_post_ra>
